<compile_context>
chip_gen: v5e
topology: v5e:2x2
jax: 0.10.0
libtpu: 0.0.40
codegen_flags: <defaults>
</compile_context>

<pallas_src>
import jax
import jax.numpy as jnp
from jax import lax
from jax.experimental import pallas as pl
from jax.experimental.pallas import tpu as pltpu


def lstm_recurrence_kernel(xb_ref,        # (T, B, 4H)  precomputed x @ Wx + b
                           h0_ref,        # (B, H)
                           c0_ref,        # (B, H)
                           wh_ref,        # (H, 4H) fused recurrent weights
                           out_ref,       # (T, B, H)
                           h_scr, c_scr): # VMEM (B, H) state carried across grid
    @pl.when(pl.program_id(0) == 0)
    def _():
        h_scr[...] = h0_ref[...]
        c_scr[...] = c0_ref[...]

    T = xb_ref.shape[0]
    H = h_scr.shape[1]
    wh = wh_ref[...]  # hoisted: loaded once per grid step, not per timestep

    def step(t, carry):
        h, c = carry
        # Single fused MXU matmul per timestep: (B, H) @ (H, 4H) -> (B, 4H)
        gates = jnp.dot(h, wh, preferred_element_type=jnp.float32) + xb_ref[t]
        # Gate order is [f, i, o, C~]: one sigmoid over the contiguous 3H
        # slice, one tanh over the last H slice.
        sig = jax.nn.sigmoid(gates[:, : 3 * H])
        f_t = sig[:, 0:H]
        i_t = sig[:, H:2 * H]
        o_t = sig[:, 2 * H:3 * H]
        g_t = jnp.tanh(gates[:, 3 * H:])
        c_new = f_t * c + i_t * g_t
        h_new = o_t * jnp.tanh(c_new)
        out_ref[t] = h_new.astype(out_ref.dtype)
        return h_new, c_new

    h, c = lax.fori_loop(0, T, step, (h_scr[...], c_scr[...]), unroll=True)
    h_scr[...] = h
    c_scr[...] = c


def lstm_forward(x, h0, c0, params, *, block_t=None):
    """x: (L, B, I) float32; h0, c0: (B, H); params: PyTorch-layout nn.Linear
    weights W_{f,i,C,o}: (H, I+H) with concat order [h, x], biases b_*: (H,)."""
    L, B, I = x.shape
    H = h0.shape[1]

    # --- Fuse the four gates.  Order: f, i, o, C~ (sigmoid gates contiguous).
    names = ("f", "i", "o", "C")
    Wh = jnp.concatenate([params[f"W_{n}"][:, :H].T for n in names], axis=1)  # (H, 4H)
    Wx = jnp.concatenate([params[f"W_{n}"][:, H:].T for n in names], axis=1)  # (I, 4H)
    b = jnp.concatenate([params[f"b_{n}"] for n in names], axis=0)            # (4H,)

    # --- Hoist the time-independent input projection out of the recurrence:
    # one (L*B, I) @ (I, 4H) GEMM instead of L tiny matmuls on the serial path.
    xb = jnp.einsum("lbi,ig->lbg", x, Wx) + b                                  # (L, B, 4H)

    # --- Pad batch to a multiple of 8 sublanes; pad L to a multiple of T.
    B_pad = max(8, ((B + 7) // 8) * 8)
    T = L if block_t is None else block_t
    L_pad = ((L + T - 1) // T) * T

    xb_p = jnp.zeros((L_pad, B_pad, 4 * H), jnp.float32).at[:L, :B].set(xb)
    h0_p = jnp.zeros((B_pad, H), jnp.float32).at[:B].set(h0)
    c0_p = jnp.zeros((B_pad, H), jnp.float32).at[:B].set(c0)

    grid = (L_pad // T,)

    grid_spec = pltpu.PrefetchScalarGridSpec(
        num_scalar_prefetch=0,
        grid=grid,
        in_specs=[
            pl.BlockSpec((T, B_pad, 4 * H), lambda i: (i, 0, 0)),  # x-projection block
            pl.BlockSpec((B_pad, H), lambda i: (0, 0)),            # h0
            pl.BlockSpec((B_pad, H), lambda i: (0, 0)),            # c0
            pl.BlockSpec((H, 4 * H), lambda i: (0, 0)),            # fused Wh
        ],
        out_specs=pl.BlockSpec((T, B_pad, H), lambda i: (i, 0, 0)),
        scratch_shapes=[pltpu.VMEM((B_pad, H), jnp.float32),
                        pltpu.VMEM((B_pad, H), jnp.float32)],
    )

    out = pl.pallas_call(
        lstm_recurrence_kernel,
        out_shape=jax.ShapeDtypeStruct((L_pad, B_pad, H), jnp.float32),
        grid_spec=grid_spec,
        compiler_params=pltpu.CompilerParams(
            dimension_semantics=("arbitrary",)),   # time blocks are sequential
    )(xb_p, h0_p, c0_p, Wh)

    return out[:L, :B]


def lstm_forward_ref(x, h0, c0, params):
    """Pure-JAX reference with identical semantics (for correctness check)."""
    L, B, I = x.shape

    def gate(name, concat):
        return concat @ params[f"W_{name}"].T + params[f"b_{name}"]

    h, c = h0, c0
    outs = []
    for t in range(L):
        concat = jnp.concatenate([h, x[t]], axis=1)  # [h, x] as in torch.cat
        f_t = jax.nn.sigmoid(gate("f", concat))
        i_t = jax.nn.sigmoid(gate("i", concat))
        c = f_t * c + i_t * jnp.tanh(gate("C", concat))
        o_t = jax.nn.sigmoid(gate("o", concat))
        h = o_t * jnp.tanh(c)
        outs.append(h)
    return jnp.stack(outs, axis=0)


if __name__ == "__main__":
    # Small shapes consistent with the module's forward: x (L, B, I)
    L, B, I, H, O = 8, 4, 16, 32, 8

    key = jax.random.PRNGKey(0)
    keys = jax.random.split(key, 12)

    scale = 1.0 / jnp.sqrt(jnp.float32(I + H))   # nn.Linear-style fan-in scale
    params = {
        "W_f": jax.random.normal(keys[0], (H, I + H), jnp.float32) * scale,
        "b_f": jax.random.normal(keys[1], (H,), jnp.float32) * scale,
        "W_i": jax.random.normal(keys[2], (H, I + H), jnp.float32) * scale,
        "b_i": jax.random.normal(keys[3], (H,), jnp.float32) * scale,
        "W_C": jax.random.normal(keys[4], (H, I + H), jnp.float32) * scale,
        "b_C": jax.random.normal(keys[5], (H,), jnp.float32) * scale,
        "W_o": jax.random.normal(keys[6], (H, I + H), jnp.float32) * scale,
        "b_o": jax.random.normal(keys[7], (H,), jnp.float32) * scale,
        # decode_linear params (defined by __init__; decode() is not exercised
        # by forward(), kept for completeness)
        "W_d": jax.random.normal(keys[8], (O, H), jnp.float32) / jnp.sqrt(jnp.float32(H)),
        "b_d": jax.random.normal(keys[9], (O,), jnp.float32) / jnp.sqrt(jnp.float32(H)),
    }

    x = jax.random.normal(keys[10], (L, B, I), jnp.float32)
    h0 = jnp.zeros((B, H), jnp.float32)
    c0 = jnp.zeros((B, H), jnp.float32)

    out = lstm_forward(x, h0, c0, params)
    out = jax.block_until_ready(out)

    ref = lstm_forward_ref(x, h0, c0, params)
    assert out.shape == (L, B, H)
    assert jnp.max(jnp.abs(out - ref)) < 1e-5, "mismatch vs pure-JAX reference"

    print("KERNEL_OK")
</pallas_src>

<mosaic_0001>
module attributes {stable_mosaic.version = 11 : i64} {
  func.func @lstm_recurrence_kernel(%arg0: i32, %arg1: memref<8x8x128xf32, #tpu.memory_space<vmem>>, %arg2: memref<8x32xf32, #tpu.memory_space<vmem>>, %arg3: memref<8x32xf32, #tpu.memory_space<vmem>>, %arg4: memref<32x128xf32, #tpu.memory_space<vmem>>, %arg5: memref<8x8x32xf32, #tpu.memory_space<vmem>>, %arg6: memref<8x32xf32, #tpu.memory_space<vmem>>, %arg7: memref<8x32xf32, #tpu.memory_space<vmem>>) attributes {dimension_semantics = [#tpu.dimension_semantics<arbitrary>], iteration_bounds = array<i64: 1>, scalar_prefetch = 0 : i64, scratch_operands = 2 : i64, tpu.core_type = #tpu.core_type<tc>, window_params = [{transform_indices = @transform_0, window_bounds = array<i64: 8, 8, 128>}, {pipeline_mode = #tpu.pipeline_mode<synchronous>, transform_indices = @transform_1, window_bounds = array<i64: 8, 32>}, {pipeline_mode = #tpu.pipeline_mode<synchronous>, transform_indices = @transform_2, window_bounds = array<i64: 8, 32>}, {pipeline_mode = #tpu.pipeline_mode<synchronous>, transform_indices = @transform_3, window_bounds = array<i64: 32, 128>}, {transform_indices = @transform_4, window_bounds = array<i64: 8, 8, 32>}]} {
    %c0_i32 = arith.constant 0 : i32
    %0 = arith.cmpi eq, %arg0, %c0_i32 : i32
    %1 = arith.extui %0 : i1 to i32
    %c0_i32_0 = arith.constant 0 : i32
    %2 = arith.cmpi ne, %1, %c0_i32_0 : i32
    scf.if %2 {
      %c0_58 = arith.constant 0 : index
      %c0_59 = arith.constant 0 : index
      %208 = vector.load %arg2[%c0_58, %c0_59] : memref<8x32xf32, #tpu.memory_space<vmem>>, vector<8x32xf32>
      %c0_60 = arith.constant 0 : index
      %c0_61 = arith.constant 0 : index
      %209 = vector.load %arg6[%c0_60, %c0_61] : memref<8x32xf32, #tpu.memory_space<vmem>>, vector<8x32xf32>
      tpu.vector_store %arg6[%c0_60, %c0_61], %208 {strides = array<i32>} : memref<8x32xf32, #tpu.memory_space<vmem>>, vector<8x32xf32>,
      %c0_62 = arith.constant 0 : index
      %c0_63 = arith.constant 0 : index
      %210 = vector.load %arg3[%c0_62, %c0_63] : memref<8x32xf32, #tpu.memory_space<vmem>>, vector<8x32xf32>
      %c0_64 = arith.constant 0 : index
      %c0_65 = arith.constant 0 : index
      %211 = vector.load %arg7[%c0_64, %c0_65] : memref<8x32xf32, #tpu.memory_space<vmem>>, vector<8x32xf32>
      tpu.vector_store %arg7[%c0_64, %c0_65], %210 {strides = array<i32>} : memref<8x32xf32, #tpu.memory_space<vmem>>, vector<8x32xf32>,
    } else {
    }
    %c0 = arith.constant 0 : index
    %c0_1 = arith.constant 0 : index
    %3 = vector.load %arg4[%c0, %c0_1] : memref<32x128xf32, #tpu.memory_space<vmem>>, vector<32x128xf32>
    %c0_2 = arith.constant 0 : index
    %c0_3 = arith.constant 0 : index
    %4 = vector.load %arg6[%c0_2, %c0_3] : memref<8x32xf32, #tpu.memory_space<vmem>>, vector<8x32xf32>
    %c0_4 = arith.constant 0 : index
    %c0_5 = arith.constant 0 : index
    %5 = vector.load %arg7[%c0_4, %c0_5] : memref<8x32xf32, #tpu.memory_space<vmem>>, vector<8x32xf32>
    %c0_i32_6 = arith.constant 0 : i32
    %cst = arith.constant dense<0.000000e+00> : vector<8x128xf32>
    %6 = tpu.matmul %4, %3, %cst {dimension_numbers = #tpu.dot_dimension_numbers<[1], [0], [0], [1], [0, 0, 1, 1], [], []>} : vector<8x32xf32>, vector<32x128xf32>, vector<8x128xf32> -> vector<8x128xf32>
    %7 = arith.index_cast %c0_i32_6 : i32 to index
    %c0_7 = arith.constant 0 : index
    %c0_8 = arith.constant 0 : index
    %8 = vector.load %arg1[%7, %c0_7, %c0_8] : memref<8x8x128xf32, #tpu.memory_space<vmem>>, vector<1x8x128xf32>
    %9 = vector.shape_cast %8 : vector<1x8x128xf32> to vector<8x128xf32>
    %10 = arith.addf %6, %9 : vector<8x128xf32>
    %11 = vector.extract_strided_slice %10 {offsets = [0, 0], sizes = [8, 96], strides = [1, 1]} : vector<8x128xf32> to vector<8x96xf32>
    %12 = arith.negf %11 : vector<8x96xf32>
    %13 = math.exp %12 : vector<8x96xf32>
    %cst_9 = arith.constant 1.000000e+00 : f32
    %14 = vector.broadcast %cst_9 : f32 to vector<8x96xf32>
    %15 = arith.addf %14, %13 : vector<8x96xf32>
    %16 = arith.divf %14, %15 : vector<8x96xf32>
    %17 = vector.extract_strided_slice %16 {offsets = [0, 0], sizes = [8, 32], strides = [1, 1]} : vector<8x96xf32> to vector<8x32xf32>
    %18 = vector.extract_strided_slice %16 {offsets = [0, 32], sizes = [8, 32], strides = [1, 1]} : vector<8x96xf32> to vector<8x32xf32>
    %19 = vector.extract_strided_slice %16 {offsets = [0, 64], sizes = [8, 32], strides = [1, 1]} : vector<8x96xf32> to vector<8x32xf32>
    %20 = vector.extract_strided_slice %10 {offsets = [0, 96], sizes = [8, 32], strides = [1, 1]} : vector<8x128xf32> to vector<8x32xf32>
    %21 = math.tanh %20 : vector<8x32xf32>
    %22 = arith.mulf %17, %5 : vector<8x32xf32>
    %23 = arith.mulf %18, %21 : vector<8x32xf32>
    %24 = arith.addf %22, %23 : vector<8x32xf32>
    %25 = math.tanh %24 : vector<8x32xf32>
    %26 = arith.mulf %19, %25 : vector<8x32xf32>
    %27 = arith.index_cast %c0_i32_6 : i32 to index
    %c0_10 = arith.constant 0 : index
    %c0_11 = arith.constant 0 : index
    %28 = vector.load %arg5[%27, %c0_10, %c0_11] : memref<8x8x32xf32, #tpu.memory_space<vmem>>, vector<1x8x32xf32>
    %29 = vector.shape_cast %28 : vector<1x8x32xf32> to vector<8x32xf32>
    %30 = vector.shape_cast %26 : vector<8x32xf32> to vector<1x8x32xf32>
    tpu.vector_store %arg5[%27, %c0_10, %c0_11], %30 {strides = array<i32>} : memref<8x8x32xf32, #tpu.memory_space<vmem>>, vector<1x8x32xf32>,
    %c1_i32 = arith.constant 1 : i32
    %cst_12 = arith.constant dense<0.000000e+00> : vector<8x128xf32>
    %31 = tpu.matmul %26, %3, %cst_12 {dimension_numbers = #tpu.dot_dimension_numbers<[1], [0], [0], [1], [0, 0, 1, 1], [], []>} : vector<8x32xf32>, vector<32x128xf32>, vector<8x128xf32> -> vector<8x128xf32>
    %32 = arith.index_cast %c1_i32 : i32 to index
    %c0_13 = arith.constant 0 : index
    %c0_14 = arith.constant 0 : index
    %33 = vector.load %arg1[%32, %c0_13, %c0_14] : memref<8x8x128xf32, #tpu.memory_space<vmem>>, vector<1x8x128xf32>
    %34 = vector.shape_cast %33 : vector<1x8x128xf32> to vector<8x128xf32>
    %35 = arith.addf %31, %34 : vector<8x128xf32>
    %36 = vector.extract_strided_slice %35 {offsets = [0, 0], sizes = [8, 96], strides = [1, 1]} : vector<8x128xf32> to vector<8x96xf32>
    %37 = arith.negf %36 : vector<8x96xf32>
    %38 = math.exp %37 : vector<8x96xf32>
    %cst_15 = arith.constant 1.000000e+00 : f32
    %39 = vector.broadcast %cst_15 : f32 to vector<8x96xf32>
    %40 = arith.addf %39, %38 : vector<8x96xf32>
    %41 = arith.divf %39, %40 : vector<8x96xf32>
    %42 = vector.extract_strided_slice %41 {offsets = [0, 0], sizes = [8, 32], strides = [1, 1]} : vector<8x96xf32> to vector<8x32xf32>
    %43 = vector.extract_strided_slice %41 {offsets = [0, 32], sizes = [8, 32], strides = [1, 1]} : vector<8x96xf32> to vector<8x32xf32>
    %44 = vector.extract_strided_slice %41 {offsets = [0, 64], sizes = [8, 32], strides = [1, 1]} : vector<8x96xf32> to vector<8x32xf32>
    %45 = vector.extract_strided_slice %35 {offsets = [0, 96], sizes = [8, 32], strides = [1, 1]} : vector<8x128xf32> to vector<8x32xf32>
    %46 = math.tanh %45 : vector<8x32xf32>
    %47 = arith.mulf %42, %24 : vector<8x32xf32>
    %48 = arith.mulf %43, %46 : vector<8x32xf32>
    %49 = arith.addf %47, %48 : vector<8x32xf32>
    %50 = math.tanh %49 : vector<8x32xf32>
    %51 = arith.mulf %44, %50 : vector<8x32xf32>
    %52 = arith.index_cast %c1_i32 : i32 to index
    %c0_16 = arith.constant 0 : index
    %c0_17 = arith.constant 0 : index
    %53 = vector.load %arg5[%52, %c0_16, %c0_17] : memref<8x8x32xf32, #tpu.memory_space<vmem>>, vector<1x8x32xf32>
    %54 = vector.shape_cast %53 : vector<1x8x32xf32> to vector<8x32xf32>
    %55 = vector.shape_cast %51 : vector<8x32xf32> to vector<1x8x32xf32>
    tpu.vector_store %arg5[%52, %c0_16, %c0_17], %55 {strides = array<i32>} : memref<8x8x32xf32, #tpu.memory_space<vmem>>, vector<1x8x32xf32>,
    %c2_i32 = arith.constant 2 : i32
    %cst_18 = arith.constant dense<0.000000e+00> : vector<8x128xf32>
    %56 = tpu.matmul %51, %3, %cst_18 {dimension_numbers = #tpu.dot_dimension_numbers<[1], [0], [0], [1], [0, 0, 1, 1], [], []>} : vector<8x32xf32>, vector<32x128xf32>, vector<8x128xf32> -> vector<8x128xf32>
    %57 = arith.index_cast %c2_i32 : i32 to index
    %c0_19 = arith.constant 0 : index
    %c0_20 = arith.constant 0 : index
    %58 = vector.load %arg1[%57, %c0_19, %c0_20] : memref<8x8x128xf32, #tpu.memory_space<vmem>>, vector<1x8x128xf32>
    %59 = vector.shape_cast %58 : vector<1x8x128xf32> to vector<8x128xf32>
    %60 = arith.addf %56, %59 : vector<8x128xf32>
    %61 = vector.extract_strided_slice %60 {offsets = [0, 0], sizes = [8, 96], strides = [1, 1]} : vector<8x128xf32> to vector<8x96xf32>
    %62 = arith.negf %61 : vector<8x96xf32>
    %63 = math.exp %62 : vector<8x96xf32>
    %cst_21 = arith.constant 1.000000e+00 : f32
    %64 = vector.broadcast %cst_21 : f32 to vector<8x96xf32>
    %65 = arith.addf %64, %63 : vector<8x96xf32>
    %66 = arith.divf %64, %65 : vector<8x96xf32>
    %67 = vector.extract_strided_slice %66 {offsets = [0, 0], sizes = [8, 32], strides = [1, 1]} : vector<8x96xf32> to vector<8x32xf32>
    %68 = vector.extract_strided_slice %66 {offsets = [0, 32], sizes = [8, 32], strides = [1, 1]} : vector<8x96xf32> to vector<8x32xf32>
    %69 = vector.extract_strided_slice %66 {offsets = [0, 64], sizes = [8, 32], strides = [1, 1]} : vector<8x96xf32> to vector<8x32xf32>
    %70 = vector.extract_strided_slice %60 {offsets = [0, 96], sizes = [8, 32], strides = [1, 1]} : vector<8x128xf32> to vector<8x32xf32>
    %71 = math.tanh %70 : vector<8x32xf32>
    %72 = arith.mulf %67, %49 : vector<8x32xf32>
    %73 = arith.mulf %68, %71 : vector<8x32xf32>
    %74 = arith.addf %72, %73 : vector<8x32xf32>
    %75 = math.tanh %74 : vector<8x32xf32>
    %76 = arith.mulf %69, %75 : vector<8x32xf32>
    %77 = arith.index_cast %c2_i32 : i32 to index
    %c0_22 = arith.constant 0 : index
    %c0_23 = arith.constant 0 : index
    %78 = vector.load %arg5[%77, %c0_22, %c0_23] : memref<8x8x32xf32, #tpu.memory_space<vmem>>, vector<1x8x32xf32>
    %79 = vector.shape_cast %78 : vector<1x8x32xf32> to vector<8x32xf32>
    %80 = vector.shape_cast %76 : vector<8x32xf32> to vector<1x8x32xf32>
    tpu.vector_store %arg5[%77, %c0_22, %c0_23], %80 {strides = array<i32>} : memref<8x8x32xf32, #tpu.memory_space<vmem>>, vector<1x8x32xf32>,
    %c3_i32 = arith.constant 3 : i32
    %cst_24 = arith.constant dense<0.000000e+00> : vector<8x128xf32>
    %81 = tpu.matmul %76, %3, %cst_24 {dimension_numbers = #tpu.dot_dimension_numbers<[1], [0], [0], [1], [0, 0, 1, 1], [], []>} : vector<8x32xf32>, vector<32x128xf32>, vector<8x128xf32> -> vector<8x128xf32>
    %82 = arith.index_cast %c3_i32 : i32 to index
    %c0_25 = arith.constant 0 : index
    %c0_26 = arith.constant 0 : index
    %83 = vector.load %arg1[%82, %c0_25, %c0_26] : memref<8x8x128xf32, #tpu.memory_space<vmem>>, vector<1x8x128xf32>
    %84 = vector.shape_cast %83 : vector<1x8x128xf32> to vector<8x128xf32>
    %85 = arith.addf %81, %84 : vector<8x128xf32>
    %86 = vector.extract_strided_slice %85 {offsets = [0, 0], sizes = [8, 96], strides = [1, 1]} : vector<8x128xf32> to vector<8x96xf32>
    %87 = arith.negf %86 : vector<8x96xf32>
    %88 = math.exp %87 : vector<8x96xf32>
    %cst_27 = arith.constant 1.000000e+00 : f32
    %89 = vector.broadcast %cst_27 : f32 to vector<8x96xf32>
    %90 = arith.addf %89, %88 : vector<8x96xf32>
    %91 = arith.divf %89, %90 : vector<8x96xf32>
    %92 = vector.extract_strided_slice %91 {offsets = [0, 0], sizes = [8, 32], strides = [1, 1]} : vector<8x96xf32> to vector<8x32xf32>
    %93 = vector.extract_strided_slice %91 {offsets = [0, 32], sizes = [8, 32], strides = [1, 1]} : vector<8x96xf32> to vector<8x32xf32>
    %94 = vector.extract_strided_slice %91 {offsets = [0, 64], sizes = [8, 32], strides = [1, 1]} : vector<8x96xf32> to vector<8x32xf32>
    %95 = vector.extract_strided_slice %85 {offsets = [0, 96], sizes = [8, 32], strides = [1, 1]} : vector<8x128xf32> to vector<8x32xf32>
    %96 = math.tanh %95 : vector<8x32xf32>
    %97 = arith.mulf %92, %74 : vector<8x32xf32>
    %98 = arith.mulf %93, %96 : vector<8x32xf32>
    %99 = arith.addf %97, %98 : vector<8x32xf32>
    %100 = math.tanh %99 : vector<8x32xf32>
    %101 = arith.mulf %94, %100 : vector<8x32xf32>
    %102 = arith.index_cast %c3_i32 : i32 to index
    %c0_28 = arith.constant 0 : index
    %c0_29 = arith.constant 0 : index
    %103 = vector.load %arg5[%102, %c0_28, %c0_29] : memref<8x8x32xf32, #tpu.memory_space<vmem>>, vector<1x8x32xf32>
    %104 = vector.shape_cast %103 : vector<1x8x32xf32> to vector<8x32xf32>
    %105 = vector.shape_cast %101 : vector<8x32xf32> to vector<1x8x32xf32>
    tpu.vector_store %arg5[%102, %c0_28, %c0_29], %105 {strides = array<i32>} : memref<8x8x32xf32, #tpu.memory_space<vmem>>, vector<1x8x32xf32>,
    %c4_i32 = arith.constant 4 : i32
    %cst_30 = arith.constant dense<0.000000e+00> : vector<8x128xf32>
    %106 = tpu.matmul %101, %3, %cst_30 {dimension_numbers = #tpu.dot_dimension_numbers<[1], [0], [0], [1], [0, 0, 1, 1], [], []>} : vector<8x32xf32>, vector<32x128xf32>, vector<8x128xf32> -> vector<8x128xf32>
    %107 = arith.index_cast %c4_i32 : i32 to index
    %c0_31 = arith.constant 0 : index
    %c0_32 = arith.constant 0 : index
    %108 = vector.load %arg1[%107, %c0_31, %c0_32] : memref<8x8x128xf32, #tpu.memory_space<vmem>>, vector<1x8x128xf32>
    %109 = vector.shape_cast %108 : vector<1x8x128xf32> to vector<8x128xf32>
    %110 = arith.addf %106, %109 : vector<8x128xf32>
    %111 = vector.extract_strided_slice %110 {offsets = [0, 0], sizes = [8, 96], strides = [1, 1]} : vector<8x128xf32> to vector<8x96xf32>
    %112 = arith.negf %111 : vector<8x96xf32>
    %113 = math.exp %112 : vector<8x96xf32>
    %cst_33 = arith.constant 1.000000e+00 : f32
    %114 = vector.broadcast %cst_33 : f32 to vector<8x96xf32>
    %115 = arith.addf %114, %113 : vector<8x96xf32>
    %116 = arith.divf %114, %115 : vector<8x96xf32>
    %117 = vector.extract_strided_slice %116 {offsets = [0, 0], sizes = [8, 32], strides = [1, 1]} : vector<8x96xf32> to vector<8x32xf32>
    %118 = vector.extract_strided_slice %116 {offsets = [0, 32], sizes = [8, 32], strides = [1, 1]} : vector<8x96xf32> to vector<8x32xf32>
    %119 = vector.extract_strided_slice %116 {offsets = [0, 64], sizes = [8, 32], strides = [1, 1]} : vector<8x96xf32> to vector<8x32xf32>
    %120 = vector.extract_strided_slice %110 {offsets = [0, 96], sizes = [8, 32], strides = [1, 1]} : vector<8x128xf32> to vector<8x32xf32>
    %121 = math.tanh %120 : vector<8x32xf32>
    %122 = arith.mulf %117, %99 : vector<8x32xf32>
    %123 = arith.mulf %118, %121 : vector<8x32xf32>
    %124 = arith.addf %122, %123 : vector<8x32xf32>
    %125 = math.tanh %124 : vector<8x32xf32>
    %126 = arith.mulf %119, %125 : vector<8x32xf32>
    %127 = arith.index_cast %c4_i32 : i32 to index
    %c0_34 = arith.constant 0 : index
    %c0_35 = arith.constant 0 : index
    %128 = vector.load %arg5[%127, %c0_34, %c0_35] : memref<8x8x32xf32, #tpu.memory_space<vmem>>, vector<1x8x32xf32>
    %129 = vector.shape_cast %128 : vector<1x8x32xf32> to vector<8x32xf32>
    %130 = vector.shape_cast %126 : vector<8x32xf32> to vector<1x8x32xf32>
    tpu.vector_store %arg5[%127, %c0_34, %c0_35], %130 {strides = array<i32>} : memref<8x8x32xf32, #tpu.memory_space<vmem>>, vector<1x8x32xf32>,
    %c5_i32 = arith.constant 5 : i32
    %cst_36 = arith.constant dense<0.000000e+00> : vector<8x128xf32>
    %131 = tpu.matmul %126, %3, %cst_36 {dimension_numbers = #tpu.dot_dimension_numbers<[1], [0], [0], [1], [0, 0, 1, 1], [], []>} : vector<8x32xf32>, vector<32x128xf32>, vector<8x128xf32> -> vector<8x128xf32>
    %132 = arith.index_cast %c5_i32 : i32 to index
    %c0_37 = arith.constant 0 : index
    %c0_38 = arith.constant 0 : index
    %133 = vector.load %arg1[%132, %c0_37, %c0_38] : memref<8x8x128xf32, #tpu.memory_space<vmem>>, vector<1x8x128xf32>
    %134 = vector.shape_cast %133 : vector<1x8x128xf32> to vector<8x128xf32>
    %135 = arith.addf %131, %134 : vector<8x128xf32>
    %136 = vector.extract_strided_slice %135 {offsets = [0, 0], sizes = [8, 96], strides = [1, 1]} : vector<8x128xf32> to vector<8x96xf32>
    %137 = arith.negf %136 : vector<8x96xf32>
    %138 = math.exp %137 : vector<8x96xf32>
    %cst_39 = arith.constant 1.000000e+00 : f32
    %139 = vector.broadcast %cst_39 : f32 to vector<8x96xf32>
    %140 = arith.addf %139, %138 : vector<8x96xf32>
    %141 = arith.divf %139, %140 : vector<8x96xf32>
    %142 = vector.extract_strided_slice %141 {offsets = [0, 0], sizes = [8, 32], strides = [1, 1]} : vector<8x96xf32> to vector<8x32xf32>
    %143 = vector.extract_strided_slice %141 {offsets = [0, 32], sizes = [8, 32], strides = [1, 1]} : vector<8x96xf32> to vector<8x32xf32>
    %144 = vector.extract_strided_slice %141 {offsets = [0, 64], sizes = [8, 32], strides = [1, 1]} : vector<8x96xf32> to vector<8x32xf32>
    %145 = vector.extract_strided_slice %135 {offsets = [0, 96], sizes = [8, 32], strides = [1, 1]} : vector<8x128xf32> to vector<8x32xf32>
    %146 = math.tanh %145 : vector<8x32xf32>
    %147 = arith.mulf %142, %124 : vector<8x32xf32>
    %148 = arith.mulf %143, %146 : vector<8x32xf32>
    %149 = arith.addf %147, %148 : vector<8x32xf32>
    %150 = math.tanh %149 : vector<8x32xf32>
    %151 = arith.mulf %144, %150 : vector<8x32xf32>
    %152 = arith.index_cast %c5_i32 : i32 to index
    %c0_40 = arith.constant 0 : index
    %c0_41 = arith.constant 0 : index
    %153 = vector.load %arg5[%152, %c0_40, %c0_41] : memref<8x8x32xf32, #tpu.memory_space<vmem>>, vector<1x8x32xf32>
    %154 = vector.shape_cast %153 : vector<1x8x32xf32> to vector<8x32xf32>
    %155 = vector.shape_cast %151 : vector<8x32xf32> to vector<1x8x32xf32>
    tpu.vector_store %arg5[%152, %c0_40, %c0_41], %155 {strides = array<i32>} : memref<8x8x32xf32, #tpu.memory_space<vmem>>, vector<1x8x32xf32>,
    %c6_i32 = arith.constant 6 : i32
    %cst_42 = arith.constant dense<0.000000e+00> : vector<8x128xf32>
    %156 = tpu.matmul %151, %3, %cst_42 {dimension_numbers = #tpu.dot_dimension_numbers<[1], [0], [0], [1], [0, 0, 1, 1], [], []>} : vector<8x32xf32>, vector<32x128xf32>, vector<8x128xf32> -> vector<8x128xf32>
    %157 = arith.index_cast %c6_i32 : i32 to index
    %c0_43 = arith.constant 0 : index
    %c0_44 = arith.constant 0 : index
    %158 = vector.load %arg1[%157, %c0_43, %c0_44] : memref<8x8x128xf32, #tpu.memory_space<vmem>>, vector<1x8x128xf32>
    %159 = vector.shape_cast %158 : vector<1x8x128xf32> to vector<8x128xf32>
    %160 = arith.addf %156, %159 : vector<8x128xf32>
    %161 = vector.extract_strided_slice %160 {offsets = [0, 0], sizes = [8, 96], strides = [1, 1]} : vector<8x128xf32> to vector<8x96xf32>
    %162 = arith.negf %161 : vector<8x96xf32>
    %163 = math.exp %162 : vector<8x96xf32>
    %cst_45 = arith.constant 1.000000e+00 : f32
    %164 = vector.broadcast %cst_45 : f32 to vector<8x96xf32>
    %165 = arith.addf %164, %163 : vector<8x96xf32>
    %166 = arith.divf %164, %165 : vector<8x96xf32>
    %167 = vector.extract_strided_slice %166 {offsets = [0, 0], sizes = [8, 32], strides = [1, 1]} : vector<8x96xf32> to vector<8x32xf32>
    %168 = vector.extract_strided_slice %166 {offsets = [0, 32], sizes = [8, 32], strides = [1, 1]} : vector<8x96xf32> to vector<8x32xf32>
    %169 = vector.extract_strided_slice %166 {offsets = [0, 64], sizes = [8, 32], strides = [1, 1]} : vector<8x96xf32> to vector<8x32xf32>
    %170 = vector.extract_strided_slice %160 {offsets = [0, 96], sizes = [8, 32], strides = [1, 1]} : vector<8x128xf32> to vector<8x32xf32>
    %171 = math.tanh %170 : vector<8x32xf32>
    %172 = arith.mulf %167, %149 : vector<8x32xf32>
    %173 = arith.mulf %168, %171 : vector<8x32xf32>
    %174 = arith.addf %172, %173 : vector<8x32xf32>
    %175 = math.tanh %174 : vector<8x32xf32>
    %176 = arith.mulf %169, %175 : vector<8x32xf32>
    %177 = arith.index_cast %c6_i32 : i32 to index
    %c0_46 = arith.constant 0 : index
    %c0_47 = arith.constant 0 : index
    %178 = vector.load %arg5[%177, %c0_46, %c0_47] : memref<8x8x32xf32, #tpu.memory_space<vmem>>, vector<1x8x32xf32>
    %179 = vector.shape_cast %178 : vector<1x8x32xf32> to vector<8x32xf32>
    %180 = vector.shape_cast %176 : vector<8x32xf32> to vector<1x8x32xf32>
    tpu.vector_store %arg5[%177, %c0_46, %c0_47], %180 {strides = array<i32>} : memref<8x8x32xf32, #tpu.memory_space<vmem>>, vector<1x8x32xf32>,
    %c7_i32 = arith.constant 7 : i32
    %cst_48 = arith.constant dense<0.000000e+00> : vector<8x128xf32>
    %181 = tpu.matmul %176, %3, %cst_48 {dimension_numbers = #tpu.dot_dimension_numbers<[1], [0], [0], [1], [0, 0, 1, 1], [], []>} : vector<8x32xf32>, vector<32x128xf32>, vector<8x128xf32> -> vector<8x128xf32>
    %182 = arith.index_cast %c7_i32 : i32 to index
    %c0_49 = arith.constant 0 : index
    %c0_50 = arith.constant 0 : index
    %183 = vector.load %arg1[%182, %c0_49, %c0_50] : memref<8x8x128xf32, #tpu.memory_space<vmem>>, vector<1x8x128xf32>
    %184 = vector.shape_cast %183 : vector<1x8x128xf32> to vector<8x128xf32>
    %185 = arith.addf %181, %184 : vector<8x128xf32>
    %186 = vector.extract_strided_slice %185 {offsets = [0, 0], sizes = [8, 96], strides = [1, 1]} : vector<8x128xf32> to vector<8x96xf32>
    %187 = arith.negf %186 : vector<8x96xf32>
    %188 = math.exp %187 : vector<8x96xf32>
    %cst_51 = arith.constant 1.000000e+00 : f32
    %189 = vector.broadcast %cst_51 : f32 to vector<8x96xf32>
    %190 = arith.addf %189, %188 : vector<8x96xf32>
    %191 = arith.divf %189, %190 : vector<8x96xf32>
    %192 = vector.extract_strided_slice %191 {offsets = [0, 0], sizes = [8, 32], strides = [1, 1]} : vector<8x96xf32> to vector<8x32xf32>
    %193 = vector.extract_strided_slice %191 {offsets = [0, 32], sizes = [8, 32], strides = [1, 1]} : vector<8x96xf32> to vector<8x32xf32>
    %194 = vector.extract_strided_slice %191 {offsets = [0, 64], sizes = [8, 32], strides = [1, 1]} : vector<8x96xf32> to vector<8x32xf32>
    %195 = vector.extract_strided_slice %185 {offsets = [0, 96], sizes = [8, 32], strides = [1, 1]} : vector<8x128xf32> to vector<8x32xf32>
    %196 = math.tanh %195 : vector<8x32xf32>
    %197 = arith.mulf %192, %174 : vector<8x32xf32>
    %198 = arith.mulf %193, %196 : vector<8x32xf32>
    %199 = arith.addf %197, %198 : vector<8x32xf32>
    %200 = math.tanh %199 : vector<8x32xf32>
    %201 = arith.mulf %194, %200 : vector<8x32xf32>
    %202 = arith.index_cast %c7_i32 : i32 to index
    %c0_52 = arith.constant 0 : index
    %c0_53 = arith.constant 0 : index
    %203 = vector.load %arg5[%202, %c0_52, %c0_53] : memref<8x8x32xf32, #tpu.memory_space<vmem>>, vector<1x8x32xf32>
    %204 = vector.shape_cast %203 : vector<1x8x32xf32> to vector<8x32xf32>
    %205 = vector.shape_cast %201 : vector<8x32xf32> to vector<1x8x32xf32>
    tpu.vector_store %arg5[%202, %c0_52, %c0_53], %205 {strides = array<i32>} : memref<8x8x32xf32, #tpu.memory_space<vmem>>, vector<1x8x32xf32>,
    %c8_i32 = arith.constant 8 : i32
    %c0_54 = arith.constant 0 : index
    %c0_55 = arith.constant 0 : index
    %206 = vector.load %arg6[%c0_54, %c0_55] : memref<8x32xf32, #tpu.memory_space<vmem>>, vector<8x32xf32>
    tpu.vector_store %arg6[%c0_54, %c0_55], %201 {strides = array<i32>} : memref<8x32xf32, #tpu.memory_space<vmem>>, vector<8x32xf32>,
    %c0_56 = arith.constant 0 : index
    %c0_57 = arith.constant 0 : index
    %207 = vector.load %arg7[%c0_56, %c0_57] : memref<8x32xf32, #tpu.memory_space<vmem>>, vector<8x32xf32>
    tpu.vector_store %arg7[%c0_56, %c0_57], %199 {strides = array<i32>} : memref<8x32xf32, #tpu.memory_space<vmem>>, vector<8x32xf32>,
    return
  }
  func.func @transform_0(%arg0: i32) -> (i32, i32, i32) {
    %c0_i32 = arith.constant 0 : i32
    %c0_i32_0 = arith.constant 0 : i32
    %c0_i32_1 = arith.constant 0 : i32
    return %arg0, %c0_i32, %c0_i32_0 : i32, i32, i32
  }
  func.func @transform_1(%arg0: i32) -> (i32, i32) {
    %c0_i32 = arith.constant 0 : i32
    %c0_i32_0 = arith.constant 0 : i32
    %c0_i32_1 = arith.constant 0 : i32
    return %c0_i32, %c0_i32_0 : i32, i32
  }
  func.func @transform_2(%arg0: i32) -> (i32, i32) {
    %c0_i32 = arith.constant 0 : i32
    %c0_i32_0 = arith.constant 0 : i32
    %c0_i32_1 = arith.constant 0 : i32
    return %c0_i32, %c0_i32_0 : i32, i32
  }
  func.func @transform_3(%arg0: i32) -> (i32, i32) {
    %c0_i32 = arith.constant 0 : i32
    %c0_i32_0 = arith.constant 0 : i32
    %c0_i32_1 = arith.constant 0 : i32
    return %c0_i32, %c0_i32_0 : i32, i32
  }
  func.func @transform_4(%arg0: i32) -> (i32, i32, i32) {
    %c0_i32 = arith.constant 0 : i32
    %c0_i32_0 = arith.constant 0 : i32
    %c0_i32_1 = arith.constant 0 : i32
    return %arg0, %c0_i32, %c0_i32_0 : i32, i32, i32
  }
}

</mosaic_0001>

<bundles_post_ra>
// kernel: tpu_custom_call.1
= control target key start
LH: loop header
LB: loop body
LE: loop exit
PB: predicated region body
PF: predicated region fallthrough
CT: control target
= control target key end

     0   :  { %9 = vsyncpa [#allocation5], 0  ;;  %s978_s0 = inlined_call_operand.hbm [shape: f32[8,8,128], index: 0, kind: input, shape index: {}]   ;;  %s979_s1 = inlined_call_operand.hbm [shape: f32[8,32], index: 1, kind: input, shape index: {}]   ;;  %s980_s2 = inlined_call_operand.hbm [shape: f32[8,32], index: 2, kind: input, shape index: {}]   ;;  %s981_s3 = inlined_call_operand.hbm [shape: f32[32,128], index: 3, kind: input, shape index: {}]   ;;  %s982_s4 = inlined_call_operand.hbm [shape: f32[8,8,32], index: 4, kind: output, shape index: {}]  }
   0x1   :  { %10 = vsyncpa [#allocation8], 0 }
   0x2   :  { %11 = vsyncpa [#allocation11], 0  ;;  %s31_s17 = sshll.u32 %s979_s1, 4  ;;  %s32_s17 = int_to_ptr.hbm [resolvable:$true] %s31_s17 }
   0x3   :  { %12 = vsyncpa [#allocation6], 0  ;;  %s868_s18 = smov [#allocation7]   ;;  %s17_s22 = sshll.u32 %s978_s0, 4  ;;  %s18_s22 = int_to_ptr.hbm [resolvable:$true] %s17_s22 }
   0x4   :  { %s33_s19 = sshll.u32 %s868_s18, 4  ;;  %s869_s23 = smov [#allocation4]   ;;  %s34_s19 = int_to_ptr.vmem [resolvable:$true] %s33_s19 }
   0x5   :  { %36 = dma.hbm_to_vmem [thread:$0]  %s32_s17, 128, %s34_s19, [#allocation8]  }
   0x6   :  { %s19_s24 = sshll.u32 %s869_s23, 4  ;;  %s870_s25 = smov 128   ;;  %s20_s24 = int_to_ptr.vmem [resolvable:$true] %s19_s24 }
   0x7   :  { %s871_s26 = smov 8   ;;  %s42_s28 = sshll.u32 %s980_s2, 4  ;;  %s43_s28 = int_to_ptr.hbm [resolvable:$true] %s42_s28 }
   0x8   :  { %25 = dma.hbm_to_vmem [thread:$0]  %s18_s22, 1024, %s20_s24, [#allocation5], %s870_s25, %s870_s25, %s871_s26  }
   0x9   :  { %s872_s29 = smov [#allocation9]   ;;  %s52_s6 = sshll.u32 %s981_s3, 4  ;;  %s53_s6 = int_to_ptr.hbm [resolvable:$true] %s52_s6 }
   0xa   :  { %s44_s30 = sshll.u32 %s872_s29, 4  ;;  %s873_s7 = smov [#allocation10]   ;;  %s45_s30 = int_to_ptr.vmem [resolvable:$true] %s44_s30 }
   0xb   :  { %47 = dma.hbm_to_vmem [thread:$0]  %s43_s28, 128, %s45_s30, [#allocation8]  }
   0xc   :  { %s54_s8 = sshll.u32 %s873_s7, 4  ;;  %s55_s8 = int_to_ptr.vmem [resolvable:$true] %s54_s8 }
   0xd   :  { %60 = dma.hbm_to_vmem [thread:$0]  %s53_s6, 512, %s55_s8, [#allocation11], %s870_s25, %s870_s25, %s871_s26  }
   0xe   :  { %860 = dma.done.wait [#allocation5], 1024  }
   0xf   :  { %861 = vsyncadd [#allocation5], 4294966272 }
  0x10   :  { %862 = dma.done.wait [#allocation8], 256  }
  0x11   :  { %863 = vsyncadd [#allocation8], 4294967040 }
  0x12   :  { %864 = dma.done.wait [#allocation11], 512  }
  0x13   :  { %865 = vsyncadd [#allocation11], 4294966784  ;;  %vm82_vm0 = vcmask 261120   ;;  %v89_v0 = vld [vmem:[#allocation10 + $0x18] sm:$0xff]  ;;  %v88_v1 = vld [vmem:[#allocation10 + $0x10] sm:$0xff]  ;;  %s874_s2 = smov 64  }
  0x14   :  { %109 = vmatpush.msra.mxu0 %v89_v0  ;;  %v81_v2 = vld [vmem:[#allocation7] sm:$0xff]  ;;  %175 = vmatpush.msra.mxu1 %v89_v0  ;;  %v87_v3 = vld [vmem:[#allocation10 + $0x8] sm:$0xff]  ;;  %v86_v4 = vld [vmem:[#allocation10] sm:$0xff]  ;;  %s875_s3 = smov 96   ;;  %s876_s9 = smov [#allocation12]  }
  0x15   :  { %83 = vst.msk [vmem:[#allocation2] sm:$0xff] %vm82_vm0, %v81_v2  ;;  %242 = vmatpush.msra.mxu2 %v89_v0  ;;  %309 = vmatpush.msra.mxu3 %v89_v0  ;;  %v84_v6 = vld [vmem:[#allocation9] sm:$0xff]  ;;  %v92_v7 = vld [vmem:[#allocation4] sm:$0xff]  ;;  %v227_v60 = vld [vmem:[#allocation4 + $0x10] sm:$0xff]  ;;  %s634_s10 = sshll.u32 %s876_s9, 4  ;;  %s636_s13 = sshll.u32 %s982_s4, 4  ;;  %s635_s10 = int_to_ptr.vmem [resolvable:$true] %s634_s10  ;;  %s637_s13 = int_to_ptr.hbm [resolvable:$true] %s636_s13 }
  0x16   :  { %110 = vmatpush.msra.mxu0 %v88_v1  ;;  %176 = vmatpush.msra.mxu1 %v88_v1  ;;  %85 = vst.msk [vmem:[#allocation3] sm:$0xff] %vm82_vm0, %v84_v6  ;;  %v160_v34 = vld [vmem:[#allocation4 + $0x8] sm:$0xff] }
  0x17   :  { %243 = vmatpush.msra.mxu2 %v88_v1  ;;  %310 = vmatpush.msra.mxu3 %v88_v1 }
  0x18   :  { %111 = vmatpush.msra.mxu0 %v87_v3  ;;  %177 = vmatpush.msra.mxu1 %v87_v3 }
  0x19   :  { %244 = vmatpush.msra.mxu2 %v87_v3  ;;  %311 = vmatpush.msra.mxu3 %v87_v3 }
  0x1a   :  { %112 = vmatpush.msra.mxu0 %v86_v4  ;;  %178 = vmatpush.msra.mxu1 %v86_v4 }
  0x1b   :  { %245 = vmatpush.msra.mxu2 %v86_v4  ;;  %312 = vmatpush.msra.mxu3 %v86_v4 }
  0x1c   :  { %v90_v5 = vld [vmem:[#allocation2] sm:$0xff]  ;;  %376 = vmatpush.msrb.mxu0 %v89_v0  ;;  %443 = vmatpush.msrb.mxu1 %v89_v0 }
  0x1d   :  { %651 = vmatmul.msk.f32.vlgmr.msra.gmra.mxu0 %vm82_vm0, %v90_v5  ;;  %510 = vmatpush.msrb.mxu2 %v89_v0  ;;  %v91_v26 = vld [vmem:[#allocation3] sm:$0xff] }
  0x1e   :  { %377 = vmatpush.msrb.mxu0 %v88_v1  ;;  %444 = vmatpush.msrb.mxu1 %v88_v1 }
  0x1f   :  { %511 = vmatpush.msrb.mxu2 %v88_v1  ;;  %577 = vmatpush.msrb.mxu3 %v89_v0 }
  0x20   :  { %378 = vmatpush.msrb.mxu0 %v87_v3  ;;  %445 = vmatpush.msrb.mxu1 %v87_v3 }
  0x21   :  { %512 = vmatpush.msrb.mxu2 %v87_v3  ;;  %578 = vmatpush.msrb.mxu3 %v88_v1 }
  0x22   :  { %379 = vmatpush.msrb.mxu0 %v86_v4  ;;  %446 = vmatpush.msrb.mxu1 %v86_v4 }
  0x23   :  { %513 = vmatpush.msrb.mxu2 %v86_v4  ;;  %579 = vmatpush.msrb.mxu3 %v87_v3 }
  0x25   :  { %580 = vmatpush.msrb.mxu3 %v86_v4 }
  0x9a   :  { %v114_v8 = vpop.f32.mrf.mxu0 }
  0x9b   :  { %v115_v9 = vadd.f32 %v114_v8, %v92_v7 }
  0x9d   :  { %676 = vtanh.f32 %v115_v9  ;;  %v652_v11 = vmul.f32 -1.442695, %v115_v9 }
  0x9f   :  { %678 = vpow2.f32 %v652_v11 }
  0xa3   :  { %v677_v10 = vpop.eup %676 }
  0xa4   :  { %139 = vrot.lane.b32.xlu0 %v677_v10, %s874_s2 }
  0xa5   :  { %v679_v12 = vpop.eup %678 }
  0xa6   :  { %v120_v13 = vadd.f32 1.0, %v679_v12 }
  0xa8   :  { %680 = vrcp.f32 %v120_v13  ;;  %v132_v19 = vand.u32 2147483648, %v120_v13  ;;  %vm126_vm2 = vweird.f32 %v120_v13  ;;  %v130_v20 = vand.u32 2147483647, %v120_v13 }
  0xaa   :  { %v133_v22 = vor.u32 1.1754944e-38, %v132_v19  ;;  %vm131_vm4 = vcmp.eq.f32.partialorder %v130_v20, 8.507059e+37 }
  0xae   :  { %v681_v14 = vpop.eup %680 }
  0xaf   :  { %v122_v15 = vmul.f32 %v681_v14, %v120_v13  ;;  %vm127_vm1 = vweird.f32 %v681_v14 }
  0xb0   :  { %vm128_vm3 = vmor %vm126_vm2, %vm127_vm1 }
  0xb1   :  { %v123_v16 = vsub.f32 1.0, %v122_v15 }
  0xb3   :  { %v124_v17 = vmul.f32 %v681_v14, %v123_v16 }
  0xb5   :  { %v125_v18 = vadd.f32 %v681_v14, %v124_v17 }
  0xb7   :  { %v129_v21 = vsel %vm128_vm3, %v681_v14, %v125_v18 }
  0xb8   :  { %v134_v24 = vsel %vm131_vm4, %v133_v22, %v129_v21  ;;  %v294_v22 = vld [vmem:[#allocation4 + $0x18] sm:$0xff] }
  0xb9   :  { %v137_v27 = vmul.f32 %v134_v24, %v91_v26 }
 0x116   :  { %v140_v23 = vpop.permute.xlu0 %139 }
 0x117   :  { %v142_v25 = vmul.f32 %v140_v23, %v134_v24 }
 0x119   :  { %144 = vrot.lane.b32.xlu0 %v142_v25, %s875_s3 }
 0x18b   :  { %v145_v28 = vpop.permute.xlu0 %144 }
 0x18c   :  { %v147_v29 = vadd.f32 %v145_v28, %v137_v27 }
 0x18e   :  { %682 = vtanh.f32 %v147_v29 }
 0x194   :  { %v683_v30 = vpop.eup %682 }
 0x195   :  { %150 = vrot.lane.b32.xlu1 %v683_v30, %s874_s2 }
 0x207   :  { %v151_v31 = vpop.permute.xlu1 %150 }
 0x208   :  { %v153_v32 = vmul.f32 %v151_v31, %v134_v24 }
 0x20a   :  { %155 = vrot.lane.b32.xlu1 %v153_v32, %s874_s2 }
 0x27c   :  { %v156_v33 = vpop.permute.xlu1 %155 }
 0x27d   :  { %158 = vst.msk [vmem:[#allocation12] sm:$0xff] %vm82_vm0, %v156_v33  ;;  %653 = vmatmul.msk.f32.vlgmr.msra.gmra.mxu1 %vm82_vm0, %v156_v33 }
 0x2fa   :  { %v180_v35 = vpop.f32.mrf.mxu1 }
 0x2fb   :  { %v181_v36 = vadd.f32 %v180_v35, %v160_v34 }
 0x2fd   :  { %684 = vtanh.f32 %v181_v36  ;;  %v654_v38 = vmul.f32 -1.442695, %v181_v36 }
 0x2ff   :  { %686 = vpow2.f32 %v654_v38 }
 0x303   :  { %v685_v37 = vpop.eup %684 }
 0x304   :  { %205 = vrot.lane.b32.xlu2 %v685_v37, %s874_s2 }
 0x305   :  { %v687_v39 = vpop.eup %686 }
 0x306   :  { %v186_v40 = vadd.f32 1.0, %v687_v39 }
 0x308   :  { %688 = vrcp.f32 %v186_v40  ;;  %v198_v46 = vand.u32 2147483648, %v186_v40  ;;  %vm192_vm6 = vweird.f32 %v186_v40  ;;  %v196_v47 = vand.u32 2147483647, %v186_v40 }
 0x30a   :  { %v199_v49 = vor.u32 1.1754944e-38, %v198_v46  ;;  %vm197_vm8 = vcmp.eq.f32.partialorder %v196_v47, 8.507059e+37 }
 0x30e   :  { %v689_v41 = vpop.eup %688 }
 0x30f   :  { %v188_v42 = vmul.f32 %v689_v41, %v186_v40  ;;  %vm193_vm5 = vweird.f32 %v689_v41 }
 0x310   :  { %vm194_vm7 = vmor %vm192_vm6, %vm193_vm5 }
 0x311   :  { %v189_v43 = vsub.f32 1.0, %v188_v42 }
 0x313   :  { %v190_v44 = vmul.f32 %v689_v41, %v189_v43 }
 0x315   :  { %v191_v45 = vadd.f32 %v689_v41, %v190_v44 }
 0x317   :  { %v195_v48 = vsel %vm194_vm7, %v689_v41, %v191_v45 }
 0x318   :  { %v200_v51 = vsel %vm197_vm8, %v199_v49, %v195_v48  ;;  %v361_v48 = vld [vmem:[#allocation4 + $0x20] sm:$0xff] }
 0x319   :  { %v203_v53 = vmul.f32 %v200_v51, %v147_v29 }
 0x35e   :  { %v206_v50 = vpop.permute.xlu2 %205 }
 0x35f   :  { %v208_v52 = vmul.f32 %v206_v50, %v200_v51 }
 0x361   :  { %210 = vrot.lane.b32.xlu2 %v208_v52, %s875_s3 }
 0x3bb   :  { %v211_v54 = vpop.permute.xlu2 %210 }
 0x3bc   :  { %v213_v55 = vadd.f32 %v211_v54, %v203_v53 }
 0x3be   :  { %690 = vtanh.f32 %v213_v55 }
 0x3c4   :  { %v691_v56 = vpop.eup %690 }
 0x3c5   :  { %216 = vrot.lane.b32.xlu0 %v691_v56, %s874_s2 }
 0x437   :  { %v217_v57 = vpop.permute.xlu0 %216 }
 0x438   :  { %v219_v58 = vmul.f32 %v217_v57, %v200_v51 }
 0x43a   :  { %221 = vrot.lane.b32.xlu1 %v219_v58, %s874_s2 }
 0x4ac   :  { %v222_v59 = vpop.permute.xlu1 %221 }
 0x4ad   :  { %225 = vst.msk [vmem:[#allocation12 + $0x8] sm:$0xff] %vm82_vm0, %v222_v59  ;;  %655 = vmatmul.msk.f32.vlgmr.msra.gmra.mxu2 %vm82_vm0, %v222_v59 }
 0x530   :  { %v247_v61 = vpop.f32.mrf.mxu2 }
 0x531   :  { %v248_v62 = vadd.f32 %v247_v61, %v227_v60 }
 0x533   :  { %692 = vtanh.f32 %v248_v62  ;;  %v656_v0 = vmul.f32 -1.442695, %v248_v62 }
 0x535   :  { %694 = vpow2.f32 %v656_v0 }
 0x539   :  { %v693_v63 = vpop.eup %692 }
 0x53a   :  { %272 = vrot.lane.b32.xlu2 %v693_v63, %s874_s2 }
 0x53b   :  { %v695_v1 = vpop.eup %694 }
 0x53c   :  { %v253_v2 = vadd.f32 1.0, %v695_v1 }
 0x53e   :  { %696 = vrcp.f32 %v253_v2  ;;  %v265_v8 = vand.u32 2147483648, %v253_v2  ;;  %vm259_vm10 = vweird.f32 %v253_v2  ;;  %v263_v9 = vand.u32 2147483647, %v253_v2 }
 0x540   :  { %v266_v11 = vor.u32 1.1754944e-38, %v265_v8  ;;  %vm264_vm12 = vcmp.eq.f32.partialorder %v263_v9, 8.507059e+37 }
 0x544   :  { %v697_v3 = vpop.eup %696 }
 0x545   :  { %v255_v4 = vmul.f32 %v697_v3, %v253_v2  ;;  %vm260_vm9 = vweird.f32 %v697_v3 }
 0x546   :  { %vm261_vm11 = vmor %vm259_vm10, %vm260_vm9 }
 0x547   :  { %v256_v5 = vsub.f32 1.0, %v255_v4 }
 0x549   :  { %v257_v6 = vmul.f32 %v697_v3, %v256_v5 }
 0x54b   :  { %v258_v7 = vadd.f32 %v697_v3, %v257_v6 }
 0x54d   :  { %v262_v10 = vsel %vm261_vm11, %v697_v3, %v258_v7 }
 0x54e   :  { %v267_v13 = vsel %vm264_vm12, %v266_v11, %v262_v10  ;;  %v428_v10 = vld [vmem:[#allocation4 + $0x28] sm:$0xff] }
 0x54f   :  { %v270_v15 = vmul.f32 %v267_v13, %v213_v55 }
 0x594   :  { %v273_v12 = vpop.permute.xlu2 %272 }
 0x595   :  { %v275_v14 = vmul.f32 %v273_v12, %v267_v13 }
 0x597   :  { %277 = vrot.lane.b32.xlu0 %v275_v14, %s875_s3 }
 0x609   :  { %v278_v16 = vpop.permute.xlu0 %277 }
 0x60a   :  { %v280_v17 = vadd.f32 %v278_v16, %v270_v15 }
 0x60c   :  { %698 = vtanh.f32 %v280_v17 }
 0x612   :  { %v699_v18 = vpop.eup %698 }
 0x613   :  { %283 = vrot.lane.b32.xlu1 %v699_v18, %s874_s2 }
 0x685   :  { %v284_v19 = vpop.permute.xlu1 %283 }
 0x686   :  { %v286_v20 = vmul.f32 %v284_v19, %v267_v13 }
 0x688   :  { %288 = vrot.lane.b32.xlu2 %v286_v20, %s874_s2 }
 0x6e2   :  { %v289_v21 = vpop.permute.xlu2 %288 }
 0x6e3   :  { %292 = vst.msk [vmem:[#allocation12 + $0x10] sm:$0xff] %vm82_vm0, %v289_v21  ;;  %657 = vmatmul.msk.f32.vlgmr.msra.gmra.mxu3 %vm82_vm0, %v289_v21 }
 0x766   :  { %v314_v23 = vpop.f32.mrf.mxu3 }
 0x767   :  { %v315_v24 = vadd.f32 %v314_v23, %v294_v22 }
 0x769   :  { %700 = vtanh.f32 %v315_v24  ;;  %v658_v26 = vmul.f32 -1.442695, %v315_v24 }
 0x76b   :  { %702 = vpow2.f32 %v658_v26 }
 0x76f   :  { %v701_v25 = vpop.eup %700 }
 0x770   :  { %339 = vrot.lane.b32.xlu0 %v701_v25, %s874_s2 }
 0x771   :  { %v703_v27 = vpop.eup %702 }
 0x772   :  { %v320_v28 = vadd.f32 1.0, %v703_v27 }
 0x774   :  { %704 = vrcp.f32 %v320_v28  ;;  %v332_v34 = vand.u32 2147483648, %v320_v28  ;;  %vm326_vm14 = vweird.f32 %v320_v28  ;;  %v330_v35 = vand.u32 2147483647, %v320_v28 }
 0x776   :  { %v333_v37 = vor.u32 1.1754944e-38, %v332_v34  ;;  %vm331_vm1 = vcmp.eq.f32.partialorder %v330_v35, 8.507059e+37 }
 0x77a   :  { %v705_v29 = vpop.eup %704 }
 0x77b   :  { %v322_v30 = vmul.f32 %v705_v29, %v320_v28  ;;  %vm327_vm13 = vweird.f32 %v705_v29 }
 0x77c   :  { %vm328_vm15 = vmor %vm326_vm14, %vm327_vm13 }
 0x77d   :  { %v323_v31 = vsub.f32 1.0, %v322_v30 }
 0x77f   :  { %v324_v32 = vmul.f32 %v705_v29, %v323_v31 }
 0x781   :  { %v325_v33 = vadd.f32 %v705_v29, %v324_v32 }
 0x783   :  { %v329_v36 = vsel %vm328_vm15, %v705_v29, %v325_v33 }
 0x784   :  { %v334_v39 = vsel %vm331_vm1, %v333_v37, %v329_v36  ;;  %v495_v36 = vld [vmem:[#allocation4 + $0x30] sm:$0xff] }
 0x785   :  { %v337_v41 = vmul.f32 %v334_v39, %v280_v17 }
 0x7e2   :  { %v340_v38 = vpop.permute.xlu0 %339 }
 0x7e3   :  { %v342_v40 = vmul.f32 %v340_v38, %v334_v39 }
 0x7e5   :  { %344 = vrot.lane.b32.xlu1 %v342_v40, %s875_s3 }
 0x857   :  { %v345_v42 = vpop.permute.xlu1 %344 }
 0x858   :  { %v347_v43 = vadd.f32 %v345_v42, %v337_v41 }
 0x85a   :  { %706 = vtanh.f32 %v347_v43 }
 0x860   :  { %v707_v44 = vpop.eup %706 }
 0x861   :  { %350 = vrot.lane.b32.xlu2 %v707_v44, %s874_s2 }
 0x8bb   :  { %v351_v45 = vpop.permute.xlu2 %350 }
 0x8bc   :  { %v353_v46 = vmul.f32 %v351_v45, %v334_v39 }
 0x8be   :  { %355 = vrot.lane.b32.xlu0 %v353_v46, %s874_s2 }
 0x930   :  { %v356_v47 = vpop.permute.xlu0 %355 }
 0x931   :  { %359 = vst.msk [vmem:[#allocation12 + $0x18] sm:$0xff] %vm82_vm0, %v356_v47  ;;  %659 = vmatmul.msk.f32.vlgmr.msrb.gmra.mxu0 %vm82_vm0, %v356_v47 }
 0x9ae   :  { %v381_v49 = vpop.f32.mrf.mxu0 }
 0x9af   :  { %v382_v50 = vadd.f32 %v381_v49, %v361_v48 }
 0x9b1   :  { %708 = vtanh.f32 %v382_v50  ;;  %v660_v52 = vmul.f32 -1.442695, %v382_v50 }
 0x9b3   :  { %710 = vpow2.f32 %v660_v52 }
 0x9b7   :  { %v709_v51 = vpop.eup %708 }
 0x9b8   :  { %406 = vrot.lane.b32.xlu1 %v709_v51, %s874_s2 }
 0x9b9   :  { %v711_v53 = vpop.eup %710 }
 0x9ba   :  { %v387_v54 = vadd.f32 1.0, %v711_v53 }
 0x9bc   :  { %712 = vrcp.f32 %v387_v54  ;;  %v399_v60 = vand.u32 2147483648, %v387_v54  ;;  %vm393_vm3 = vweird.f32 %v387_v54  ;;  %v397_v61 = vand.u32 2147483647, %v387_v54 }
 0x9be   :  { %v400_v63 = vor.u32 1.1754944e-38, %v399_v60  ;;  %vm398_vm5 = vcmp.eq.f32.partialorder %v397_v61, 8.507059e+37 }
 0x9c2   :  { %v713_v55 = vpop.eup %712 }
 0x9c3   :  { %v389_v56 = vmul.f32 %v713_v55, %v387_v54  ;;  %vm394_vm2 = vweird.f32 %v713_v55 }
 0x9c4   :  { %vm395_vm4 = vmor %vm393_vm3, %vm394_vm2 }
 0x9c5   :  { %v390_v57 = vsub.f32 1.0, %v389_v56 }
 0x9c7   :  { %v391_v58 = vmul.f32 %v713_v55, %v390_v57 }
 0x9c9   :  { %v392_v59 = vadd.f32 %v713_v55, %v391_v58 }
 0x9cb   :  { %v396_v62 = vsel %vm395_vm4, %v713_v55, %v392_v59 }
 0x9cc   :  { %v401_v1 = vsel %vm398_vm5, %v400_v63, %v396_v62  ;;  %v562_v62 = vld [vmem:[#allocation4 + $0x38] sm:$0xff] }
 0x9cd   :  { %v404_v3 = vmul.f32 %v401_v1, %v347_v43 }
 0xa2a   :  { %v407_v0 = vpop.permute.xlu1 %406 }
 0xa2b   :  { %v409_v2 = vmul.f32 %v407_v0, %v401_v1 }
 0xa2d   :  { %411 = vrot.lane.b32.xlu2 %v409_v2, %s875_s3 }
 0xa87   :  { %v412_v4 = vpop.permute.xlu2 %411 }
 0xa88   :  { %v414_v5 = vadd.f32 %v412_v4, %v404_v3 }
 0xa8a   :  { %714 = vtanh.f32 %v414_v5 }
 0xa90   :  { %v715_v6 = vpop.eup %714 }
 0xa91   :  { %417 = vrot.lane.b32.xlu0 %v715_v6, %s874_s2 }
 0xb03   :  { %v418_v7 = vpop.permute.xlu0 %417 }
 0xb04   :  { %v420_v8 = vmul.f32 %v418_v7, %v401_v1 }
 0xb06   :  { %422 = vrot.lane.b32.xlu1 %v420_v8, %s874_s2 }
 0xb78   :  { %v423_v9 = vpop.permute.xlu1 %422 }
 0xb79   :  { %426 = vst.msk [vmem:[#allocation12 + $0x20] sm:$0xff] %vm82_vm0, %v423_v9  ;;  %661 = vmatmul.msk.f32.vlgmr.msrb.gmra.mxu1 %vm82_vm0, %v423_v9 }
 0xbf6   :  { %v448_v11 = vpop.f32.mrf.mxu1 }
 0xbf7   :  { %v449_v12 = vadd.f32 %v448_v11, %v428_v10 }
 0xbf9   :  { %716 = vtanh.f32 %v449_v12  ;;  %v662_v14 = vmul.f32 -1.442695, %v449_v12 }
 0xbfb   :  { %718 = vpow2.f32 %v662_v14 }
 0xbff   :  { %v717_v13 = vpop.eup %716 }
 0xc00   :  { %473 = vrot.lane.b32.xlu2 %v717_v13, %s874_s2 }
 0xc01   :  { %v719_v15 = vpop.eup %718 }
 0xc02   :  { %v454_v16 = vadd.f32 1.0, %v719_v15 }
 0xc04   :  { %720 = vrcp.f32 %v454_v16  ;;  %v466_v22 = vand.u32 2147483648, %v454_v16  ;;  %vm460_vm7 = vweird.f32 %v454_v16  ;;  %v464_v23 = vand.u32 2147483647, %v454_v16 }
 0xc06   :  { %v467_v25 = vor.u32 1.1754944e-38, %v466_v22  ;;  %vm465_vm9 = vcmp.eq.f32.partialorder %v464_v23, 8.507059e+37 }
 0xc0a   :  { %v721_v17 = vpop.eup %720 }
 0xc0b   :  { %v456_v18 = vmul.f32 %v721_v17, %v454_v16  ;;  %vm461_vm6 = vweird.f32 %v721_v17 }
 0xc0c   :  { %vm462_vm8 = vmor %vm460_vm7, %vm461_vm6 }
 0xc0d   :  { %v457_v19 = vsub.f32 1.0, %v456_v18 }
 0xc0f   :  { %v458_v20 = vmul.f32 %v721_v17, %v457_v19 }
 0xc11   :  { %v459_v21 = vadd.f32 %v721_v17, %v458_v20 }
 0xc13   :  { %v463_v24 = vsel %vm462_vm8, %v721_v17, %v459_v21 }
 0xc14   :  { %v468_v27 = vsel %vm465_vm9, %v467_v25, %v463_v24 }
 0xc15   :  { %v471_v29 = vmul.f32 %v468_v27, %v414_v5 }
 0xc5a   :  { %v474_v26 = vpop.permute.xlu2 %473 }
 0xc5b   :  { %v476_v28 = vmul.f32 %v474_v26, %v468_v27 }
 0xc5d   :  { %478 = vrot.lane.b32.xlu0 %v476_v28, %s875_s3 }
 0xccf   :  { %v479_v30 = vpop.permute.xlu0 %478 }
 0xcd0   :  { %v481_v31 = vadd.f32 %v479_v30, %v471_v29 }
 0xcd2   :  { %722 = vtanh.f32 %v481_v31 }
 0xcd8   :  { %v723_v32 = vpop.eup %722 }
 0xcd9   :  { %484 = vrot.lane.b32.xlu1 %v723_v32, %s874_s2 }
 0xd4b   :  { %v485_v33 = vpop.permute.xlu1 %484 }
 0xd4c   :  { %v487_v34 = vmul.f32 %v485_v33, %v468_v27 }
 0xd4e   :  { %489 = vrot.lane.b32.xlu2 %v487_v34, %s874_s2 }
 0xda8   :  { %v490_v35 = vpop.permute.xlu2 %489 }
 0xda9   :  { %493 = vst.msk [vmem:[#allocation12 + $0x28] sm:$0xff] %vm82_vm0, %v490_v35  ;;  %663 = vmatmul.msk.f32.vlgmr.msrb.gmra.mxu2 %vm82_vm0, %v490_v35 }
 0xe2c   :  { %v515_v37 = vpop.f32.mrf.mxu2 }
 0xe2d   :  { %v516_v38 = vadd.f32 %v515_v37, %v495_v36 }
 0xe2f   :  { %724 = vtanh.f32 %v516_v38  ;;  %v664_v40 = vmul.f32 -1.442695, %v516_v38 }
 0xe31   :  { %726 = vpow2.f32 %v664_v40 }
 0xe35   :  { %v725_v39 = vpop.eup %724 }
 0xe36   :  { %540 = vrot.lane.b32.xlu0 %v725_v39, %s874_s2 }
 0xe37   :  { %v727_v41 = vpop.eup %726 }
 0xe38   :  { %v521_v42 = vadd.f32 1.0, %v727_v41 }
 0xe3a   :  { %728 = vrcp.f32 %v521_v42  ;;  %v533_v48 = vand.u32 2147483648, %v521_v42  ;;  %vm527_vm11 = vweird.f32 %v521_v42  ;;  %v531_v49 = vand.u32 2147483647, %v521_v42 }
 0xe3c   :  { %v534_v51 = vor.u32 1.1754944e-38, %v533_v48  ;;  %vm532_vm13 = vcmp.eq.f32.partialorder %v531_v49, 8.507059e+37 }
 0xe40   :  { %v729_v43 = vpop.eup %728 }
 0xe41   :  { %v523_v44 = vmul.f32 %v729_v43, %v521_v42  ;;  %vm528_vm10 = vweird.f32 %v729_v43 }
 0xe42   :  { %vm529_vm12 = vmor %vm527_vm11, %vm528_vm10 }
 0xe43   :  { %v524_v45 = vsub.f32 1.0, %v523_v44 }
 0xe45   :  { %v525_v46 = vmul.f32 %v729_v43, %v524_v45 }
 0xe47   :  { %v526_v47 = vadd.f32 %v729_v43, %v525_v46 }
 0xe49   :  { %v530_v50 = vsel %vm529_vm12, %v729_v43, %v526_v47 }
 0xe4a   :  { %v535_v53 = vsel %vm532_vm13, %v534_v51, %v530_v50 }
 0xe4b   :  { %v538_v55 = vmul.f32 %v535_v53, %v481_v31 }
 0xea8   :  { %v541_v52 = vpop.permute.xlu0 %540 }
 0xea9   :  { %v543_v54 = vmul.f32 %v541_v52, %v535_v53 }
 0xeab   :  { %545 = vrot.lane.b32.xlu1 %v543_v54, %s875_s3 }
 0xf1d   :  { %v546_v56 = vpop.permute.xlu1 %545 }
 0xf1e   :  { %v548_v57 = vadd.f32 %v546_v56, %v538_v55 }
 0xf20   :  { %730 = vtanh.f32 %v548_v57 }
 0xf26   :  { %v731_v58 = vpop.eup %730 }
 0xf27   :  { %551 = vrot.lane.b32.xlu2 %v731_v58, %s874_s2 }
 0xf81   :  { %v552_v59 = vpop.permute.xlu2 %551 }
 0xf82   :  { %v554_v60 = vmul.f32 %v552_v59, %v535_v53 }
 0xf84   :  { %556 = vrot.lane.b32.xlu0 %v554_v60, %s874_s2 }
 0xff6   :  { %v557_v61 = vpop.permute.xlu0 %556 }
 0xff7   :  { %560 = vst.msk [vmem:[#allocation12 + $0x30] sm:$0xff] %vm82_vm0, %v557_v61  ;;  %665 = vmatmul.msk.f32.vlgmr.msrb.gmra.mxu3 %vm82_vm0, %v557_v61 }
0x107a   :  { %v582_v63 = vpop.f32.mrf.mxu3 }
0x107b   :  { %v583_v0 = vadd.f32 %v582_v63, %v562_v62 }
0x107d   :  { %732 = vtanh.f32 %v583_v0  ;;  %v666_v2 = vmul.f32 -1.442695, %v583_v0 }
0x107f   :  { %734 = vpow2.f32 %v666_v2 }
0x1083   :  { %v733_v1 = vpop.eup %732 }
0x1084   :  { %607 = vrot.lane.b32.xlu1 %v733_v1, %s874_s2 }
0x1085   :  { %v735_v3 = vpop.eup %734 }
0x1086   :  { %v588_v4 = vadd.f32 1.0, %v735_v3 }
0x1088   :  { %736 = vrcp.f32 %v588_v4  ;;  %v600_v10 = vand.u32 2147483648, %v588_v4  ;;  %vm594_vm15 = vweird.f32 %v588_v4  ;;  %v598_v11 = vand.u32 2147483647, %v588_v4 }
0x108a   :  { %v601_v13 = vor.u32 1.1754944e-38, %v600_v10  ;;  %vm599_vm2 = vcmp.eq.f32.partialorder %v598_v11, 8.507059e+37 }
0x108e   :  { %v737_v5 = vpop.eup %736 }
0x108f   :  { %v590_v6 = vmul.f32 %v737_v5, %v588_v4  ;;  %vm595_vm14 = vweird.f32 %v737_v5 }
0x1090   :  { %vm596_vm1 = vmor %vm594_vm15, %vm595_vm14 }
0x1091   :  { %v591_v7 = vsub.f32 1.0, %v590_v6 }
0x1093   :  { %v592_v8 = vmul.f32 %v737_v5, %v591_v7 }
0x1095   :  { %v593_v9 = vadd.f32 %v737_v5, %v592_v8 }
0x1097   :  { %v597_v12 = vsel %vm596_vm1, %v737_v5, %v593_v9 }
0x1098   :  { %v602_v15 = vsel %vm599_vm2, %v601_v13, %v597_v12 }
0x1099   :  { %v605_v17 = vmul.f32 %v602_v15, %v548_v57 }
0x10f6   :  { %v608_v14 = vpop.permute.xlu1 %607 }
0x10f7   :  { %v610_v16 = vmul.f32 %v608_v14, %v602_v15 }
0x10f9   :  { %612 = vrot.lane.b32.xlu2 %v610_v16, %s875_s3 }
0x1153   :  { %v613_v18 = vpop.permute.xlu2 %612 }
0x1154   :  { %v615_v19 = vadd.f32 %v613_v18, %v605_v17 }
0x1156   :  { %738 = vtanh.f32 %v615_v19  ;;  %629 = vst.msk [vmem:[#allocation3] sm:$0xff] %vm82_vm0, %v615_v19 }
0x115c   :  { %v739_v20 = vpop.eup %738 }
0x115d   :  { %618 = vrot.lane.b32.xlu0 %v739_v20, %s874_s2 }
0x11cf   :  { %v619_v21 = vpop.permute.xlu0 %618 }
0x11d0   :  { %v621_v22 = vmul.f32 %v619_v21, %v602_v15 }
0x11d2   :  { %623 = vrot.lane.b32.xlu1 %v621_v22, %s874_s2 }
0x1244   :  { %v624_v23 = vpop.permute.xlu1 %623 }
0x1245   :  { %627 = vst.msk [vmem:[#allocation12 + $0x38] sm:$0xff] %vm82_vm0, %v624_v23 }
0x1246   :  { %628 = vst.msk [vmem:[#allocation2] sm:$0xff] %vm82_vm0, %v624_v23  ;;  %642 = dma.vmem_to_hbm [thread:$0]  %s635_s10, 1024, %s637_s13, [#allocation6], %s870_s25, %s870_s25, %s871_s26  }
0x1247   :  { %866 = dma.done.wait [#allocation6], 1024  }
0x1248   :  { %867 = vsyncadd [#allocation6], 4294966272 }
0x1249   :  { %647 = vsyncpa [#allocation5], 1 }
0x124a   :  { %648 = vsyncpa [#allocation8], 1 }
0x124b   :  { %649 = vsyncpa [#allocation11], 1 }
0x124c   :  { %650 = vsyncpa [#allocation6], 1 }

</bundles_post_ra>
